<compile_context>
chip_gen: v6e
topology: v6e:2x2x1
jax: 0.10.0
libtpu: 0.0.40
codegen_flags: <defaults>
</compile_context>

<pallas_src>
import functools
import math

import jax
import jax.numpy as jnp
from jax.experimental import pallas as pl
from jax.experimental.pallas import tpu as pltpu


def _beit_embed_kernel(*refs, apply_mask):
    """One grid step == one (batch, seq-tile) block."""
    if apply_mask:
        tok_ref, wt_ref, slab_ref, mask_ref, mtok_ref, o_ref = refs
    else:
        tok_ref, wt_ref, slab_ref, o_ref = refs

    tok = tok_ref[0]                                            # (tS, V)

    # MXU-native (M,K)x(K,N) matmul; bias is folded into slab_ref.
    emb = jnp.dot(tok, wt_ref[...],
                  preferred_element_type=jnp.float32)           # (tS, E)

    if apply_mask:
        w = mask_ref[0]                                         # (tS, 1) in {0,1}
        # Single vselect; mtok_ref already holds (mask_token - bias).
        emb = jnp.where(w > 0, mtok_ref[...], emb)

    # Single aligned full-block store: slab = [cls+pe0 ; pe[1:]+b] tile.
    o_ref[0] = (emb + slab_ref[...]).astype(o_ref.dtype)


def _pick_seq_tile(sp1):
    """Sequence tile: multiple of 8 that divides S+1; else full extent."""
    for t in (512, 256, 128):
        if sp1 % t == 0:
            return t
    return sp1


def beit_embedding(tokens, params, pe, bool_masked_pos=None):
    """tokens: (B, S, V) f32. params: PyTorch-layout weights. pe: (1, >=S+1, E)."""
    B, S, V = tokens.shape
    E = params["w"].shape[0]
    SP1 = S + 1
    dt = tokens.dtype

    # ---- one-time host-side prep (keeps the kernel store fully aligned) ----
    wt = params["w"].T                                          # (V, E)
    bias = params["b"].reshape(1, E)
    pe_slab = pe[0, :SP1, :]                                    # (S+1, E)
    add_slab = jnp.concatenate(
        [params["cls"].reshape(1, E) + pe_slab[0:1],            # row 0: cls + pe[0]
         pe_slab[1:] + bias],                                   # rows 1..S: pe + b
        axis=0)                                                 # (S+1, E)
    tokens_p = jnp.concatenate(
        [jnp.zeros((B, 1, V), dt), tokens], axis=1)             # zero CLS token row

    apply_mask = bool_masked_pos is not None

    tS = _pick_seq_tile(SP1)
    n_s = SP1 // tS

    in_specs = [
        pl.BlockSpec((1, tS, V), lambda b, s: (b, s, 0)),       # tokens (streamed)
        pl.BlockSpec((V, E), lambda b, s: (0, 0)),              # W^T (grid-invariant)
        pl.BlockSpec((tS, E), lambda b, s: (s, 0)),             # slab tile
    ]
    inputs = [tokens_p, wt, add_slab]

    if apply_mask:
        mask_p = jnp.concatenate(
            [jnp.zeros((B, 1), jnp.float32),                    # CLS row never blended
             bool_masked_pos.astype(jnp.float32)], axis=1
        ).reshape(B, SP1, 1)
        mtok_adj = params["mask_tok"].reshape(1, E) - bias      # mask_token - bias
        in_specs += [
            pl.BlockSpec((1, tS, 1), lambda b, s: (b, s, 0)),
            pl.BlockSpec((1, E), lambda b, s: (0, 0)),
        ]
        inputs += [mask_p, mtok_adj]

    # Explicit scoped-VMEM budget: double-buffered blocks + margin.
    itemsize = 4
    blk_elems = tS * V + V * E + 2 * tS * E
    if apply_mask:
        blk_elems += tS + E
    vmem_limit = int(min(2 * blk_elems * itemsize + (4 << 20), 96 << 20))

    kernel = functools.partial(_beit_embed_kernel, apply_mask=apply_mask)

    return pl.pallas_call(
        kernel,
        out_shape=jax.ShapeDtypeStruct((B, SP1, E), dt),
        grid_spec=pltpu.PrefetchScalarGridSpec(
            num_scalar_prefetch=0,
            grid=(B, n_s),
            in_specs=in_specs,
            out_specs=pl.BlockSpec((1, tS, E), lambda b, s: (b, s, 0)),
        ),
        compiler_params=pltpu.CompilerParams(
            dimension_semantics=("parallel", "parallel"),
            vmem_limit_bytes=vmem_limit),
    )(*inputs)


def make_positional_encoding(d_model, max_patches):
    """Matches the PyTorch PositionalEncoding buffer exactly: (1, max_patches, d)."""
    position = jnp.arange(max_patches, dtype=jnp.float32)[:, None]
    div_term = jnp.exp(jnp.arange(0, d_model, 2, dtype=jnp.float32)
                       * (-math.log(10000.0) / d_model))
    ang = position * div_term
    pe = jnp.zeros((max_patches, d_model), jnp.float32)
    pe = pe.at[:, 0::2].set(jnp.sin(ang)).at[:, 1::2].set(jnp.cos(ang))
    return pe[None]


def _reference(tokens, params, pe, bool_masked_pos=None):
    """Pure-JAX reference mirroring the PyTorch forward (eval mode)."""
    B, S, _ = tokens.shape
    E = params["w"].shape[0]
    x = tokens @ params["w"].T + params["b"]
    cls = jnp.broadcast_to(params["cls"], (B, 1, E))
    x = jnp.concatenate([cls, x], axis=1)
    if bool_masked_pos is not None:
        w = bool_masked_pos[..., None].astype(x.dtype)
        body = x[:, 1:] * (1 - w) + params["mask_tok"].reshape(1, 1, E) * w
        x = jnp.concatenate([x[:, :1], body], axis=1)
    return x + pe[:, :S + 1]


def _init_params(key, vocab_size, embed_size):
    """Deterministic synthetic parameters in PyTorch layout (W is (out, in))."""
    k = jax.random.split(key, 3)
    bound = 1.0 / math.sqrt(vocab_size)
    return {
        "w": jax.random.uniform(k[0], (embed_size, vocab_size), jnp.float32,
                                -bound, bound),
        "b": jax.random.uniform(k[1], (embed_size,), jnp.float32, -bound, bound),
        "cls": jax.random.normal(k[2], (1, 1, embed_size), jnp.float32),
        "mask_tok": jnp.zeros((1, 1, embed_size), jnp.float32),
    }


if __name__ == "__main__":
    # batch=2, patches(seq)=8, vocab_size=16, embed_size=32  ->  output (2, 9, 32)
    B, S, V, E = 2, 8, 16, 32

    key = jax.random.PRNGKey(0)
    kt, kp, km, kmt = jax.random.split(key, 4)
    tokens = jax.random.normal(kt, (B, S, V), jnp.float32)
    params = _init_params(kp, V, E)
    # mask_token is a learned parameter (zeros at init); give it nonzero values
    # so the masked path is exercised non-trivially.
    params["mask_tok"] = jax.random.normal(kmt, (1, 1, E), jnp.float32)
    pe = make_positional_encoding(E, S + 1)

    # Default path: bool_masked_pos=None.
    out = jax.block_until_ready(beit_embedding(tokens, params, pe))
    ref = _reference(tokens, params, pe)
    assert out.shape == (B, S + 1, E)
    assert jnp.allclose(out, ref, atol=1e-5, rtol=1e-5), \
        f"max err {jnp.max(jnp.abs(out - ref))}"

    # Masked path: bool_masked_pos provided.
    mask = jax.random.bernoulli(km, 0.5, (B, S))
    out_m = jax.block_until_ready(beit_embedding(tokens, params, pe, mask))
    ref_m = _reference(tokens, params, pe, mask)
    assert jnp.allclose(out_m, ref_m, atol=1e-5, rtol=1e-5), \
        f"max err {jnp.max(jnp.abs(out_m - ref_m))}"

    print("KERNEL_OK")
</pallas_src>

<mosaic_0001>
module attributes {stable_mosaic.version = 11 : i64} {
  func.func @_beit_embed_kernel(%arg0: i32, %arg1: i32, %arg2: memref<1x9x16xf32, #tpu.memory_space<vmem>>, %arg3: memref<16x32xf32, #tpu.memory_space<vmem>>, %arg4: memref<9x32xf32, #tpu.memory_space<vmem>>, %arg5: memref<1x9x32xf32, #tpu.memory_space<vmem>>) attributes {dimension_semantics = [#tpu.dimension_semantics<parallel>, #tpu.dimension_semantics<parallel>], iteration_bounds = array<i64: 2, 1>, scalar_prefetch = 0 : i64, scratch_operands = 0 : i64, tpu.core_type = #tpu.core_type<tc>, window_params = [{transform_indices = @transform_0, window_bounds = array<i64: 1, 9, 16>}, {pipeline_mode = #tpu.pipeline_mode<synchronous>, transform_indices = @transform_1, window_bounds = array<i64: 16, 32>}, {transform_indices = @transform_2, window_bounds = array<i64: 9, 32>}, {transform_indices = @transform_3, window_bounds = array<i64: 1, 9, 32>}]} {
    %c0 = arith.constant 0 : index
    %c0_0 = arith.constant 0 : index
    %c0_1 = arith.constant 0 : index
    %0 = vector.load %arg2[%c0, %c0_0, %c0_1] : memref<1x9x16xf32, #tpu.memory_space<vmem>>, vector<1x9x16xf32>
    %1 = vector.shape_cast %0 : vector<1x9x16xf32> to vector<9x16xf32>
    %c0_2 = arith.constant 0 : index
    %c0_3 = arith.constant 0 : index
    %2 = vector.load %arg3[%c0_2, %c0_3] : memref<16x32xf32, #tpu.memory_space<vmem>>, vector<16x32xf32>
    %cst = arith.constant dense<0.000000e+00> : vector<9x32xf32>
    %3 = tpu.matmul %1, %2, %cst {dimension_numbers = #tpu.dot_dimension_numbers<[1], [0], [0], [1], [0, 0, 1, 1], [], []>} : vector<9x16xf32>, vector<16x32xf32>, vector<9x32xf32> -> vector<9x32xf32>
    %c0_4 = arith.constant 0 : index
    %c0_5 = arith.constant 0 : index
    %4 = vector.load %arg4[%c0_4, %c0_5] : memref<9x32xf32, #tpu.memory_space<vmem>>, vector<9x32xf32>
    %5 = arith.addf %3, %4 : vector<9x32xf32>
    %c0_6 = arith.constant 0 : index
    %c0_7 = arith.constant 0 : index
    %c0_8 = arith.constant 0 : index
    %6 = vector.load %arg5[%c0_6, %c0_7, %c0_8] : memref<1x9x32xf32, #tpu.memory_space<vmem>>, vector<1x9x32xf32>
    %7 = vector.shape_cast %6 : vector<1x9x32xf32> to vector<9x32xf32>
    %8 = vector.shape_cast %5 : vector<9x32xf32> to vector<1x9x32xf32>
    tpu.vector_store %arg5[%c0_6, %c0_7, %c0_8], %8 {strides = array<i32>} : memref<1x9x32xf32, #tpu.memory_space<vmem>>, vector<1x9x32xf32>,
    return
  }
  func.func @transform_0(%arg0: i32, %arg1: i32) -> (i32, i32, i32) {
    %c0_i32 = arith.constant 0 : i32
    %c0_i32_0 = arith.constant 0 : i32
    return %arg0, %arg1, %c0_i32 : i32, i32, i32
  }
  func.func @transform_1(%arg0: i32, %arg1: i32) -> (i32, i32) {
    %c0_i32 = arith.constant 0 : i32
    %c0_i32_0 = arith.constant 0 : i32
    %c0_i32_1 = arith.constant 0 : i32
    return %c0_i32, %c0_i32_0 : i32, i32
  }
  func.func @transform_2(%arg0: i32, %arg1: i32) -> (i32, i32) {
    %c0_i32 = arith.constant 0 : i32
    %c0_i32_0 = arith.constant 0 : i32
    return %arg1, %c0_i32 : i32, i32
  }
  func.func @transform_3(%arg0: i32, %arg1: i32) -> (i32, i32, i32) {
    %c0_i32 = arith.constant 0 : i32
    %c0_i32_0 = arith.constant 0 : i32
    return %arg0, %arg1, %c0_i32 : i32, i32, i32
  }
}

</mosaic_0001>

<bundles_post_ra>
// kernel: tpu_custom_call.1
= control target key start
LH: loop header
LB: loop body
LE: loop exit
PB: predicated region body
PF: predicated region fallthrough
CT: control target
= control target key end

     0   :  { %s521_s12 = smov 0   ;;  %s523_s13 = smov 0   ;;  %s566_s0 = inlined_call_operand.vmem [shape: f32[2,9,16], index: 0, kind: input, shape index: {}]   ;;  %s567_s1 = inlined_call_operand.vmem [shape: f32[16,32], index: 1, kind: input, shape index: {}]   ;;  %s568_s2 = inlined_call_operand.vmem [shape: f32[9,32], index: 2, kind: input, shape index: {}]   ;;  %s569_s3 = inlined_call_operand.vmem [shape: f32[2,9,32], index: 3, kind: output, shape index: {}]  }
   0x1   :  { %s525_s14 = smov 0  }
   0x2 LB: > { %s25_s15 = sadd.s32 1, %s495_s13  ;;  %p431_p0 = scmp.ge.s32.totalorder %s499_s14, 1  ;;  %s499_s14 = sphi %s525_s14, %s13_s14   ;;  %s495_s13 = sphi %s523_s13, %s571_s13   ;;  %s491_s12 = sphi %s521_s12, %s570_s12  }
   0x3   : > { %p27_p1 = scmp.ge.s32.totalorder %s25_s15, 2  ;;  %p169_p2 = scmp.lt.s32.totalorder %s499_s14, 3 }
   0x5   : > { %s573_s15 = smov (%p27_p1, %s25_s15), 0  ;;  %p170_p3 = pnand %p431_p0, %p169_p2 }
   0x6   : > { %p207_p4 = scmp.lt.s32.totalorder (!%p170_p3), %s491_s12, 1 }
   0x7   : > { %173 = sbr.rel (%p170_p3) target bundleno = 215 (0xd7), region = 32 }
   0xc   : > { %v235_v0 = vld [vmem:[%s567_s1 + $0x8] sm:$0xff]  ;;  %v234_v1 = vld [vmem:[%s567_s1] sm:$0xff]  ;;  %s575_s12 = smov (!%p207_p4, %s491_s12), 1  ;;  %vm238_vm0 = vcmask 130048   ;;  %vm322_vm1 = vcmask 253952   ;;  %vm320_vm2 = vcmask 261120  }
   0xd   : > { %446 = vmatprep.subr.mxu0 %v235_v0  ;;  %s440_s20 = sshll.u32 %s575_s12, 4  ;;  %v237_v4 = vld [vmem:[%s568_s2 + $0x8] sm:$0x1]  ;;  %v236_v6 = vld [vmem:[%s568_s2] sm:$0xff] }
   0xe   : > { %447 = vmatpush3.msra.mxu0 %v235_v0  ;;  %s214_s23 = scalar_lea.vmem %s566_s0, %s440_s20  ;;  %s230_s28 = scalar_lea.vmem %s569_s3, %s440_s20 }
   0xf   : > { %448 = vmatprep.subr.mxu0 %v234_v1  ;;  %v232_v2 = vld [vmem:[%s214_s23] sm:$0xff]  ;;  %v233_v3 = vld [vmem:[%s214_s23 + $0x8] sm:$0x1] }
  0x10   : > { %449 = vmatpush3.msra.mxu0 %v234_v1  ;;  %450 = vmatprep.mubr.msk.f32.mxu0 %vm238_vm0, %v232_v2 }
  0x11   : > { %451 = vmatmul.mubr.msk.f32.vlgmr.msra.gmra.mxu0 %vm238_vm0, %v233_v3 }
  0xd1   : > { %v452_v5 = vpop.f32.mrf.mxu0 }
  0xd2   : > { %v317_v7 = vadd.f32 %v452_v5, %v237_v4 }
  0xd3   : > { %v311_v8 = vpop.f32.mrf.mxu0 }
  0xd4   : > { %323 = vst.msk [vmem:[%s230_s28 + $0x8] sm:$0x1] %vm322_vm1, %v317_v7  ;;  %v312_v9 = vadd.f32 %v311_v8, %v236_v6 }
  0xd6   : > { %321 = vst.msk [vmem:[%s230_s28] sm:$0xff] %vm320_vm2, %v312_v9 }
  0xd7 PF: > { %s13_s14 = sadd.s32 1, %s499_s14   ;;  %s570_s12 = smov %s495_s13 }
  0xd8   : > { %p10_p5 = scmp.ge.s32.totalorder %s13_s14, 4   ;;  %s571_s13 = smov %s573_s15 }
  0xda   :  { %12 = sbr.rel (!%p10_p5) target bundleno = 2 (0x2), region = 65 }

</bundles_post_ra>
